<compile_context>
chip_gen: v5e
topology: v5e:2x2
jax: 0.10.0
libtpu: 0.0.40
codegen_flags: <defaults>
</compile_context>

<pallas_src>
import functools

import jax
import jax.numpy as jnp
from jax import lax
from jax.experimental import pallas as pl
from jax.experimental.pallas import tpu as pltpu

BN_EPS = 1e-5
_INV_SQRT2 = 0.7071067811865476
_SQRT_2_OVER_PI = 0.7978845608028654


def _gelu(y, approximate):
    if approximate:
        # tanh approximation: the transcendental lands on the EUP, freeing the VALU slots
        # (the exact-erf polynomial is pure VALU work on the 5x-sized output tile).
        return 0.5 * y * (1.0 + jnp.tanh(_SQRT_2_OVER_PI * (y + 0.044715 * y * y * y)))
    # Exact erf GELU (matches torch.nn.GELU() default).
    return 0.5 * y * (1.0 + lax.erf(y * _INV_SQRT2))


# ------------------------------------------------------------------------------------------------
# Generation-aware sizing
# ------------------------------------------------------------------------------------------------
def _vmem_caps():
    """(tile budget bytes, scoped vmem limit bytes) derived from the chip's VMEM capacity."""
    try:
        cap = int(pltpu.get_tpu_info().vmem_capacity_bytes)
    except Exception:
        cap = 64 << 20                       # conservative default (v7x per-TC VMEM)
    if cap >= (128 << 20):                   # v5e / v6e: 128 MiB VMEM -> bigger tiles pay off
        return 16 << 20, 64 << 20
    return 8 << 20, 32 << 20                 # v7x: 64 MiB per TC, 32 MiB scoped default


def _largest_tile(l_pad, per_col_bytes, budget_bytes, cap_cols):
    """Largest 128-multiple divisor of l_pad whose per-column VMEM cost fits the budget."""
    hi = max(min(l_pad, cap_cols) // 128, 1)
    for k in range(hi, 0, -1):
        tl = 128 * k
        if l_pad % tl == 0 and tl * per_col_bytes <= budget_bytes:
            return tl
    return 128


# ------------------------------------------------------------------------------------------------
# Pass 1: per-batch-element partial BN sums (parallel over N; lane-wide VPU accumulation)
# ------------------------------------------------------------------------------------------------
def _bn_partial_kernel(x_ref, ps_ref, acc_ref):
    l = pl.program_id(1)

    @pl.when(l == 0)
    def _():
        acc_ref[...] = jnp.zeros_like(acc_ref)

    x = x_ref[0].astype(jnp.float32)             # (C_in, tile_s), lane-dense load
    acc_ref[0] += x                              # lane-wide partials: VPU adds only
    acc_ref[1] += x * x

    @pl.when(l == pl.num_programs(1) - 1)
    def _():
        # Single cross-lane (XLU) reduction per batch element.
        ps_ref[0] = jnp.sum(acc_ref[...], axis=-1)          # (2, C_in)


# ------------------------------------------------------------------------------------------------
# Pass 2: folded BN FMA -> ConvTranspose1d-as-matmul -> GELU -> (fused) tap de-interleave
# ------------------------------------------------------------------------------------------------
def _upscale1d_main_kernel(x_ref, w_ref, ss_ref, o_ref, *, factor, compute_dtype,
                           approximate_gelu, fuse_deinterleave):
    x = x_ref[0].astype(jnp.float32)                            # (C_in, tile_l)
    xn = x * ss_ref[:, 0:1] + ss_ref[:, 1:2]                    # BN folded into one FMA
    # Dropout(p=0.0) is the identity.
    y = jnp.dot(w_ref[...], xn.astype(compute_dtype),           # (C_out*factor, tile_l) on the MXU
                preferred_element_type=jnp.float32)
    y = _gelu(y, approximate_gelu)
    if fuse_deinterleave:
        k_out, tl = y.shape
        c_out = k_out // factor
        # (C_out*f, tile_l) -> (C_out, f, tile_l) -> (C_out, tile_l, f) -> (C_out, tile_l*f):
        # the interleave relayout stays on-chip (XLU) instead of becoming an XLA transpose over
        # the 5x-sized intermediate in HBM.
        y = jnp.swapaxes(y.reshape(c_out, factor, tl), 1, 2)
        o_ref[0] = y.reshape(c_out, tl * factor).astype(o_ref.dtype)   # lane-dense final store
    else:
        o_ref[0] = y.astype(o_ref.dtype)                        # lane-dense (k_out, tile_l) store


# ------------------------------------------------------------------------------------------------
# Wrapper
# ------------------------------------------------------------------------------------------------
def upscale1d(x, weight, gamma, beta, factor, *, compute_dtype=jnp.float32, out_dtype=None,
              approximate_gelu=False, tile_l=None, fuse_deinterleave=True, out_buffers=2):
    """Upscale1D forward (training-mode BN batch stats, dropout p=0, ConvTranspose1d, GELU).

    x: (N, C_in, L); weight: (C_in, C_out, factor); gamma/beta: (C_in,).
    Returns (N, C_out, L * factor) in out_dtype (default x.dtype).
    compute_dtype=bf16 feeds the MXU in bf16 (f32 accumulation) and out_dtype=bf16 halves the
    dominant HBM write; approximate_gelu=True uses tanh GELU (EUP) instead of exact erf (VALU).
    """
    N, C_in, L = x.shape
    assert weight.shape[0] == C_in and weight.shape[2] == factor
    C_out = weight.shape[1]
    k_out = C_out * factor
    out_dtype = x.dtype if out_dtype is None else out_dtype

    tile_budget, vmem_limit = _vmem_caps()

    # Zero-pad L to a multiple of 128: zeros contribute nothing to sum / sum(x^2) (inv_m keeps the
    # true N*L), and lane-dense 128-multiple tiles / unmasked stores are restored for ragged L.
    L_pad = ((L + 127) // 128) * 128
    xp = x if L_pad == L else jnp.pad(x, ((0, 0), (0, 0), (0, L_pad - L)))

    # ---- Pass 1: per-n partial BN sums -> fold to per-channel (scale, shift) in XLA ------------
    # TODO(synk): variance via E[x^2] - mean^2 can cancel in f32 when |mean| >> std per channel;
    #             switch to a shifted sum-of-squares if inputs are far from standardized.
    tile_s = _largest_tile(L_pad, 16 * C_in, tile_budget, cap_cols=8192)
    ps = pl.pallas_call(
        _bn_partial_kernel,
        out_shape=jax.ShapeDtypeStruct((N, 2, C_in), jnp.float32),
        grid=(N, L_pad // tile_s),
        in_specs=[pl.BlockSpec((1, C_in, tile_s), lambda n, l: (n, 0, l))],
        out_specs=pl.BlockSpec((1, 2, C_in), lambda n, l: (n, 0, 0)),
        scratch_shapes=[pltpu.VMEM((2, C_in, tile_s), jnp.float32)],
        compiler_params=pltpu.CompilerParams(
            dimension_semantics=("parallel", "arbitrary"),       # N axis shards across v7x TCs
            vmem_limit_bytes=vmem_limit),
        cost_estimate=pl.CostEstimate(flops=3 * N * C_in * L_pad, transcendentals=0,
                                      bytes_accessed=4 * N * C_in * L_pad + 8 * N * C_in),
    )(xp)

    inv_m = 1.0 / float(N * L)                                   # true element count (pads are 0)
    tot = jnp.sum(ps, axis=0)                                    # (2, C_in)
    mean = tot[0] * inv_m
    var = tot[1] * inv_m - mean * mean                           # biased variance, like torch
    scale = gamma.astype(jnp.float32) * lax.rsqrt(var + BN_EPS)  # gamma * rsqrt(var + eps)
    shift = beta.astype(jnp.float32) - mean * scale              # beta  - mean * scale
    ss = jnp.stack([scale, shift], axis=-1)                      # (C_in, 2): folded BN params

    # ---- Pass 2: BN FMA + ConvTranspose1d-as-matmul + GELU + fused de-interleave ---------------
    # One-time tiny weight re-layout: W2T[(co*factor + k), ci] = weight[ci, co, k].
    w2t = jnp.transpose(weight, (1, 2, 0)).reshape(k_out, C_in).astype(compute_dtype)

    if tile_l is None:
        per_col = 2 * 4 * C_in + out_buffers * k_out * jnp.dtype(out_dtype).itemsize
        tile_l = _largest_tile(L_pad, per_col, tile_budget, cap_cols=4096)
        if N * (L_pad // tile_l) < 2:            # keep both v7x TensorCores busy when possible
            for k in range(tile_l // 128 - 1, 0, -1):
                if L_pad % (128 * k) == 0:
                    tile_l = 128 * k
                    break
    assert L_pad % tile_l == 0 and tile_l % 128 == 0
    grid = (N, L_pad // tile_l)

    def run_main(fused):
        if fused:
            out_shape = jax.ShapeDtypeStruct((N, C_out, L_pad * factor), out_dtype)
            out_block = (1, C_out, tile_l * factor)
        else:
            out_shape = jax.ShapeDtypeStruct((N, k_out, L_pad), out_dtype)
            out_block = (1, k_out, tile_l)
        out_kwargs = {} if out_buffers == 2 else {"pipeline_mode": pl.Buffered(out_buffers)}
        return pl.pallas_call(
            functools.partial(_upscale1d_main_kernel, factor=factor,
                              compute_dtype=compute_dtype,
                              approximate_gelu=approximate_gelu, fuse_deinterleave=fused),
            out_shape=out_shape,
            grid=grid,
            in_specs=[pl.BlockSpec((1, C_in, tile_l), lambda n, l: (n, 0, l)),   # native NCL load
                      pl.BlockSpec((k_out, C_in), lambda n, l: (0, 0)),
                      pl.BlockSpec((C_in, 2), lambda n, l: (0, 0))],
            out_specs=pl.BlockSpec(out_block, lambda n, l: (n, 0, l), **out_kwargs),
            compiler_params=pltpu.CompilerParams(
                dimension_semantics=("parallel", "parallel"),     # megacore-shardable on v7x
                vmem_limit_bytes=vmem_limit),
            cost_estimate=pl.CostEstimate(
                flops=2 * N * L_pad * C_in * k_out + 8 * N * L_pad * k_out,
                transcendentals=(N * L_pad * k_out) if approximate_gelu else 0,
                bytes_accessed=(4 * N * C_in * L_pad
                                + N * k_out * L_pad * jnp.dtype(out_dtype).itemsize
                                + k_out * C_in * jnp.dtype(compute_dtype).itemsize)),
        )(xp, w2t, ss)

    if fuse_deinterleave:
        try:
            return run_main(True)[:, :, :L * factor]
        except Exception:
            # Mosaic on this jax build could not lower the in-register (f, tile_l) interleave;
            # fall back to the un-fused kernel + XLA de-interleave (correct, more HBM traffic).
            pass
    y = run_main(False)
    y = y.reshape(N, C_out, factor, L_pad).transpose(0, 1, 3, 2).reshape(N, C_out, L_pad * factor)
    return y[:, :, :L * factor]


# ------------------------------------------------------------------------------------------------
# Pure-JAX reference mirroring the PyTorch forward (training-mode BN)
# ------------------------------------------------------------------------------------------------
def _reference(x, weight, gamma, beta, factor, approximate=False):
    mean = jnp.mean(x, axis=(0, 2), keepdims=True)
    var = jnp.mean((x - mean) ** 2, axis=(0, 2), keepdims=True)
    xn = (x - mean) * lax.rsqrt(var + BN_EPS)
    xn = xn * gamma[None, :, None] + beta[None, :, None]
    y = jnp.einsum("ncl,cok->nolk", xn, weight, precision=lax.Precision.HIGHEST)
    n, c_out, l, f = y.shape
    y = y.reshape(n, c_out, l * f)
    return _gelu(y, approximate)


if __name__ == "__main__":
    key = jax.random.PRNGKey(0)

    def make_inputs(k, n, c_in, c_out, l, factor):
        kx, kw, kg, kb = jax.random.split(k, 4)
        x = jax.random.normal(kx, (n, c_in, l), dtype=jnp.float32)
        bound = (c_in * factor) ** -0.5
        weight = jax.random.uniform(kw, (c_in, c_out, factor), dtype=jnp.float32,
                                    minval=-bound, maxval=bound)
        gamma = 1.0 + 0.1 * jax.random.normal(kg, (c_in,), dtype=jnp.float32)
        beta = 0.1 * jax.random.normal(kb, (c_in,), dtype=jnp.float32)
        return x, weight, gamma, beta

    k1, k2 = jax.random.split(key)

    # Segmentation-neck-like layer: hidden=32 channels, factor=5, L a multiple of 128.
    N, C, L, f = 2, 32, 256, 5
    x, w, g, b = make_inputs(k1, N, C, C, L, f)
    ref = _reference(x, w, g, b, f)

    # Faithful path: f32 math, exact erf GELU, fused de-interleave.
    out = jax.block_until_ready(upscale1d(x, w, g, b, f))
    assert out.shape == (N, C, L * f)
    assert jnp.allclose(out, ref, atol=1e-4, rtol=1e-4), float(jnp.max(jnp.abs(out - ref)))

    # Perf variant: bf16 MXU inputs, bf16 output (halves the dominant HBM write), tanh GELU (EUP),
    # forced 128-wide tiles -> multi-tile pipelined grid (2, 2).
    out_b = jax.block_until_ready(
        upscale1d(x, w, g, b, f, compute_dtype=jnp.bfloat16, out_dtype=jnp.bfloat16,
                  approximate_gelu=True, tile_l=128))
    ref_b = _reference(x, w, g, b, f, approximate=True)
    assert out_b.dtype == jnp.bfloat16
    assert jnp.allclose(out_b.astype(jnp.float32), ref_b, atol=4e-2, rtol=4e-2)

    # First neck layer shape (factor=2) with an awkward L (exercises the zero-padding path).
    N2, C2, L2, f2 = 2, 32, 100, 2
    x2, w2, g2, b2 = make_inputs(k2, N2, C2, C2, L2, f2)
    out2 = jax.block_until_ready(upscale1d(x2, w2, g2, b2, f2))
    ref2 = _reference(x2, w2, g2, b2, f2)
    assert out2.shape == (N2, C2, L2 * f2)
    assert jnp.allclose(out2, ref2, atol=1e-4, rtol=1e-4)

    print("KERNEL_OK")
</pallas_src>

<mosaic_0001>
module attributes {stable_mosaic.version = 11 : i64} {
  func.func @_bn_partial_kernel(%arg0: i32, %arg1: i32, %arg2: memref<1x32x256xf32, #tpu.memory_space<vmem>>, %arg3: memref<1x2x32xf32, #tpu.memory_space<vmem>>, %arg4: memref<2x32x256xf32, #tpu.memory_space<vmem>>) attributes {dimension_semantics = [#tpu.dimension_semantics<parallel>, #tpu.dimension_semantics<arbitrary>], iteration_bounds = array<i64: 2, 1>, scalar_prefetch = 0 : i64, scratch_operands = 1 : i64, tpu.core_type = #tpu.core_type<tc>, window_params = [{transform_indices = @transform_0, window_bounds = array<i64: 1, 32, 256>}, {transform_indices = @transform_1, window_bounds = array<i64: 1, 2, 32>}]} {
    %c0_i32 = arith.constant 0 : i32
    %0 = arith.cmpi eq, %arg1, %c0_i32 : i32
    %1 = arith.extui %0 : i1 to i32
    %c0_i32_0 = arith.constant 0 : i32
    %2 = arith.cmpi ne, %1, %c0_i32_0 : i32
    scf.if %2 {
      %cst = arith.constant 0.000000e+00 : f32
      %21 = vector.broadcast %cst : f32 to vector<2x32x256xf32>
      %c0_16 = arith.constant 0 : index
      %c0_17 = arith.constant 0 : index
      %c0_18 = arith.constant 0 : index
      %22 = vector.load %arg4[%c0_16, %c0_17, %c0_18] : memref<2x32x256xf32, #tpu.memory_space<vmem>>, vector<2x32x256xf32>
      tpu.vector_store %arg4[%c0_16, %c0_17, %c0_18], %21 {strides = array<i32>} : memref<2x32x256xf32, #tpu.memory_space<vmem>>, vector<2x32x256xf32>,
    } else {
    }
    %c0 = arith.constant 0 : index
    %c0_1 = arith.constant 0 : index
    %c0_2 = arith.constant 0 : index
    %3 = vector.load %arg2[%c0, %c0_1, %c0_2] : memref<1x32x256xf32, #tpu.memory_space<vmem>>, vector<1x32x256xf32>
    %4 = vector.shape_cast %3 : vector<1x32x256xf32> to vector<32x256xf32>
    %c0_3 = arith.constant 0 : index
    %c0_4 = arith.constant 0 : index
    %c0_5 = arith.constant 0 : index
    %5 = vector.load %arg4[%c0_3, %c0_4, %c0_5] : memref<2x32x256xf32, #tpu.memory_space<vmem>>, vector<1x32x256xf32>
    %6 = vector.shape_cast %5 : vector<1x32x256xf32> to vector<32x256xf32>
    %7 = arith.addf %6, %4 : vector<32x256xf32>
    %c0_6 = arith.constant 0 : index
    %c0_7 = arith.constant 0 : index
    %c0_8 = arith.constant 0 : index
    %8 = vector.load %arg4[%c0_6, %c0_7, %c0_8] : memref<2x32x256xf32, #tpu.memory_space<vmem>>, vector<1x32x256xf32>
    %9 = vector.shape_cast %8 : vector<1x32x256xf32> to vector<32x256xf32>
    %10 = vector.shape_cast %7 : vector<32x256xf32> to vector<1x32x256xf32>
    tpu.vector_store %arg4[%c0_6, %c0_7, %c0_8], %10 {strides = array<i32>} : memref<2x32x256xf32, #tpu.memory_space<vmem>>, vector<1x32x256xf32>,
    %c1 = arith.constant 1 : index
    %c0_9 = arith.constant 0 : index
    %c0_10 = arith.constant 0 : index
    %11 = vector.load %arg4[%c1, %c0_9, %c0_10] : memref<2x32x256xf32, #tpu.memory_space<vmem>>, vector<1x32x256xf32>
    %12 = vector.shape_cast %11 : vector<1x32x256xf32> to vector<32x256xf32>
    %13 = arith.mulf %4, %4 : vector<32x256xf32>
    %14 = arith.addf %12, %13 : vector<32x256xf32>
    %c1_11 = arith.constant 1 : index
    %c0_12 = arith.constant 0 : index
    %c0_13 = arith.constant 0 : index
    %15 = vector.load %arg4[%c1_11, %c0_12, %c0_13] : memref<2x32x256xf32, #tpu.memory_space<vmem>>, vector<1x32x256xf32>
    %16 = vector.shape_cast %15 : vector<1x32x256xf32> to vector<32x256xf32>
    %17 = vector.shape_cast %14 : vector<32x256xf32> to vector<1x32x256xf32>
    tpu.vector_store %arg4[%c1_11, %c0_12, %c0_13], %17 {strides = array<i32>} : memref<2x32x256xf32, #tpu.memory_space<vmem>>, vector<1x32x256xf32>,
    %c0_i32_14 = arith.constant 0 : i32
    %18 = arith.cmpi eq, %arg1, %c0_i32_14 : i32
    %19 = arith.extui %18 : i1 to i32
    %c0_i32_15 = arith.constant 0 : i32
    %20 = arith.cmpi ne, %19, %c0_i32_15 : i32
    scf.if %20 {
      %c0_16 = arith.constant 0 : index
      %c0_17 = arith.constant 0 : index
      %c0_18 = arith.constant 0 : index
      %21 = vector.load %arg4[%c0_16, %c0_17, %c0_18] : memref<2x32x256xf32, #tpu.memory_space<vmem>>, vector<2x32x256xf32>
      %cst = arith.constant dense<0.000000e+00> : vector<2x32xf32>
      %22 = vector.multi_reduction <add>, %21, %cst [2] : vector<2x32x256xf32> to vector<2x32xf32>
      %c0_19 = arith.constant 0 : index
      %c0_20 = arith.constant 0 : index
      %c0_21 = arith.constant 0 : index
      %23 = vector.load %arg3[%c0_19, %c0_20, %c0_21] : memref<1x2x32xf32, #tpu.memory_space<vmem>>, vector<1x2x32xf32>
      %24 = vector.shape_cast %23 : vector<1x2x32xf32> to vector<2x32xf32>
      %25 = vector.shape_cast %22 : vector<2x32xf32> to vector<1x2x32xf32>
      tpu.vector_store %arg3[%c0_19, %c0_20, %c0_21], %25 {strides = array<i32>} : memref<1x2x32xf32, #tpu.memory_space<vmem>>, vector<1x2x32xf32>,
    } else {
    }
    return
  }
  func.func @transform_0(%arg0: i32, %arg1: i32) -> (i32, i32, i32) {
    %c0_i32 = arith.constant 0 : i32
    %c0_i32_0 = arith.constant 0 : i32
    return %arg0, %c0_i32, %arg1 : i32, i32, i32
  }
  func.func @transform_1(%arg0: i32, %arg1: i32) -> (i32, i32, i32) {
    %c0_i32 = arith.constant 0 : i32
    %c0_i32_0 = arith.constant 0 : i32
    %c0_i32_1 = arith.constant 0 : i32
    return %arg0, %c0_i32, %c0_i32_0 : i32, i32, i32
  }
}

</mosaic_0001>

<bundles_post_ra>
// kernel: tpu_custom_call.1
= control target key start
LH: loop header
LB: loop body
LE: loop exit
PB: predicated region body
PF: predicated region fallthrough
CT: control target
= control target key end

     0   :  { %6 = vsyncpa [#allocation4], 0  ;;  %s740_s0 = inlined_call_operand.hbm [shape: f32[2,32,256], index: 0, kind: input, shape index: {}]   ;;  %s741_s1 = inlined_call_operand.hbm [shape: f32[2,2,32], index: 1, kind: output, shape index: {}]  }
   0x1   :  { %8 = vsyncpa [#allocation4 + $0x1], 0 }
   0x2   :  { %9 = vsyncpa [#allocation5], 0 }
   0x3   :  { %11 = vsyncpa [#allocation5 + $0x1], 0  ;;  %s619_s6 = smov 0   ;;  %s621_s7 = smov 0  }
   0x4   :  { %s623_s8 = smov 0   ;;  %s625_s9 = smov 0  }
   0x5   :  { %s627_s10 = smov 0   ;;  %s629_s11 = smov 0  }
   0x6 LB: > { %s414_s12 = sadd.s32 4294967295, %s605_s11   ;;  %s415_s13 = sadd.s32 4294967294, %s605_s11   ;;  %s605_s11 = sphi %s629_s11, %s17_s11   ;;  %s601_s10 = sphi %s627_s10, %s750_s10   ;;  %s597_s9 = sphi %s625_s9, %s749_s9   ;;  %s593_s8 = sphi %s623_s8, %s748_s8   ;;  %s589_s7 = sphi %s621_s7, %s747_s7   ;;  %s585_s6 = sphi %s619_s6, %s746_s6  }
   0x7   : > { %s29_s14 = sadd.s32 1, %s601_s10  ;;  %s38_s15 = sadd.s32 1, %s593_s8 }
   0x8   : > { %p31_p0 = scmp.ge.s32.totalorder %s29_s14, 2  ;;  %p45_p1 = scmp.ne.s32.totalorder %s593_s8, %s589_s7 }
   0x9   : > { %p46_p2 = scmp.eq.s32.totalorder %s605_s11, 0  ;;  %p51_p3 = scmp.ne.s32.totalorder %s589_s7, %s585_s6 }
   0xa   : > { %s752_s14 = smov (%p31_p0, %s29_s14), 0  ;;  %p52_p5 = scmp.eq.s32.totalorder %s414_s12, 0 }
   0xb   : > { %p660_p4 = por %p46_p2, %p45_p1  ;;  %s33_s17 = ssub.s32 %s601_s10, %s752_s14 }
   0xc   : > { %p75_p6 = scmp.eq.s32.totalorder %s414_s12, 1  ;;  %p36_p7 = scmp.eq.s32.totalorder %s33_s17, 0 }
   0xd   : > { %p666_p8 = por %p52_p5, %p51_p3  ;;  %p81_p10 = scmp.eq.s32.totalorder %s415_s13, 1 }
   0xe   : > { %p670_p9 = por %p75_p6, %p45_p1  ;;  %p417_p12 = scmp.ge.s32.totalorder %s605_s11, 2 }
   0xf   : > { %s675_s20 = scalar_select %p36_p7, %s593_s8, %s38_s15  }
  0x10   : > { %p677_p11 = por %p81_p10, %p51_p3  ;;  %p441_p13 = scmp.lt.s32.totalorder %s605_s11, 2 }
  0x11   : > { %s101_s22 = sand.u32 1, %s593_s8   ;;  %s428_s24 = sshll.u32 %s601_s10, 6 }
  0x12   : > { %s418_s23 = sshll.u32 %s101_s22, 6  ;;  %s112_s27 = scalar_lea.hbm %s740_s0, %s428_s24 }
  0x13   : > { %s105_s28 = scalar_lea.vmem [#allocation3], %s418_s23  ;;  %s113_s30 = sshll.u32 %s112_s27, 4  ;;  %s114_s30 = int_to_ptr.hbm [resolvable:$true] %s113_s30 }
  0x14   : > { %s115_s29 = sshll.u32 %s105_s28, 4  ;;  %p434_p0 = pnand %p441_p13, %p660_p4  ;;  %s116_s29 = int_to_ptr.vmem [resolvable:$true] %s115_s29 }
  0x15   : > { %p421_p1 = scmp.ge.s32.totalorder %s605_s11, 1  ;;  %s102_s2 = scalar_lea.sflag [#allocation4], %s101_s22 }
  0x16   : > { %s607_s3 = smov 256   ;;  %s608_s4 = smov 16  }
  0x17   : > { %436 = dma.hbm_to_vmem [thread:$0]  (!%p434_p0), %s114_s30, 1024, %s116_s29, %s102_s2, %s607_s3, %s607_s3, %s608_s4  }
  0x18   : > { %p123_p2 = scmp.lt.s32.totalorder %s605_s11, 3 }
  0x1a   : > { %p124_p3 = pnand %p421_p1, %p123_p2 }
  0x1b   : > { %s693_s5 = sand.u32 (!%p124_p3), 1, %s589_s7  }
  0x1c   : > { %127 = sbr.rel (%p124_p3) target bundleno = 178 (0xb2), region = 24  ;;  %s422_s12 = sshll.u32 (!%p124_p3), %s693_s5, 6 }
  0x1d   : > { %s130_s13 = scalar_lea.sflag (!%p124_p3), [#allocation4], %s693_s5  ;;  %s133_s15 = scalar_lea.vmem (!%p124_p3), [#allocation3], %s422_s12 }
  0x21   : > { %576 = dma.done.wait (%p666_p8), %s130_s13, 1024  }
  0x22   : > { %578 = vsyncadd (%p666_p8), %s130_s13, 4294966272  ;;  %v174_v0 = vld [vmem:[%s133_s15] sm:$0xff]  ;;  %v175_v1 = vld [vmem:[%s133_s15 + $0x8] sm:$0xff]  ;;  %v290_v26 = vlaneseq  ;;  %s423_s16 = sshll.u32 %s693_s5, 1  ;;  %s425_s17 = sshll.u32 %s597_s9, 1  ;;  %vm295_vm0 = vcmask 130112  }
  0x23   : > { %v178_v2 = vld [vmem:[%s133_s15 + $0x20] sm:$0xff]  ;;  %v258_v3 = vadd.f32 %v175_v1, %v174_v0  ;;  %v215_v4 = vmul.f32 %v174_v0, %v174_v0  ;;  %v216_v5 = vmul.f32 %v175_v1, %v175_v1  ;;  %v179_v6 = vld [vmem:[%s133_s15 + $0x28] sm:$0xff]  ;;  %v176_v8 = vld [vmem:[%s133_s15 + $0x10] sm:$0xff]  ;;  %s328_s23 = scalar_lea.hbm %s741_s1, %s425_s17  ;;  %vm299_vm1 = vcmask 195712   ;;  %s152_s9 = scalar_lea.vmem [#allocation6], %s423_s16 }
  0x24   : > { %v264_v7 = vadd.f32 %v179_v6, %v178_v2  ;;  %v177_v9 = vld [vmem:[%s133_s15 + $0x18] sm:$0xff]  ;;  %v220_v11 = vmul.f32 %v179_v6, %v179_v6  ;;  %v219_v12 = vmul.f32 %v178_v2, %v178_v2  ;;  %v217_v13 = vmul.f32 %v176_v8, %v176_v8  ;;  %v180_v18 = vld [vmem:[%s133_s15 + $0x30] sm:$0xff]  ;;  %s330_s24 = sshll.u32 %s152_s9, 4  ;;  %s332_s25 = sshll.u32 %s328_s23, 4  ;;  %s331_s24 = int_to_ptr.vmem [resolvable:$true] %s330_s24  ;;  %s333_s25 = int_to_ptr.hbm [resolvable:$true] %s332_s25 }
  0x25   : > { %259 = vadd.xlane.f32.xlu0 %v258_v3  ;;  %v270_v10 = vadd.f32 %v216_v5, %v215_v4  ;;  %v218_v14 = vmul.f32 %v177_v9, %v177_v9  ;;  %v261_v15 = vadd.f32 %v177_v9, %v176_v8  ;;  %v181_v19 = vld [vmem:[%s133_s15 + $0x38] sm:$0xff]  ;;  %v221_v20 = vmul.f32 %v180_v18, %v180_v18  ;;  %s318_s26 = scalar_lea.sflag [#allocation5], %s693_s5  ;;  %s537_s27 = sshra.s32 %s333_s25, 4  ;;  %s538_s27 = int_to_ptr.hbm [resolvable:$true] %s537_s27 }
  0x26   : > { %265 = vadd.xlane.f32.xlu2 %v264_v7  ;;  %v276_v16 = vadd.f32 %v220_v11, %v219_v12  ;;  %v222_v21 = vmul.f32 %v181_v19, %v181_v19  ;;  %v267_v22 = vadd.f32 %v181_v19, %v180_v18  ;;  %v291_v28 = vand.u32 127, %v290_v26  ;;  %s539_s28 = scalar_lea.hbm %s538_s27, 2  ;;  %s543_s2 = scalar_lea.hbm %s741_s1, 4 }
  0x27   : > { %271 = vadd.xlane.f32.xlu1 %v270_v10  ;;  %v273_v17 = vadd.f32 %v218_v14, %v217_v13  ;;  %vm303_vm2 = vcmask 261312   ;;  %vm312_vm3 = vcmask 1041409   ;;  %vm315_vm4 = vcmask 254976   ;;  %p540_p4 = scmp.ne.s32.totalorder %s538_s27, %s539_s28  ;;  %p544_p7 = scmp.lt.s32.totalorder %s538_s27, %s741_s1 }
  0x28   : > { %v279_v23 = vadd.f32 %v222_v21, %v221_v20  ;;  %v293_v30 = vadd.s32 4294967288, %v291_v28  ;;  %v297_v32 = vadd.s32 4294967280, %v291_v28  ;;  %v301_v36 = vadd.s32 4294967272, %v291_v28  ;;  %p545_p8 = scmp.lt.s32.totalorder %s543_s2, %s539_s28 }
  0x29   : > { %p541_p5 = pnand %p540_p4, %p670_p9 }
  0x2a   : > { %p546_p10 = por %p545_p8, %p544_p7 }
  0x2b   : > { %p542_p6 = pneg %p541_p5 }
  0x2d   : > { %262 = vadd.xlane.f32.xlu0 %v261_v15  ;;  %p547_p13 = pnand %p546_p10, %p542_p6 }
  0x2e   : > { %277 = vadd.xlane.f32.xlu2 %v276_v16 }
  0x2f   : > { %274 = vadd.xlane.f32.xlu1 %v273_v17 }
  0x35   : > { %268 = vadd.xlane.f32.xlu0 %v267_v22 }
  0x37   : > { %280 = vadd.xlane.f32.xlu1 %v279_v23 }
  0x98   : > { %v260_v24 = vpop.xlane.xlu0 %259 }
  0x99   : > { %v266_v27 = vpop.xlane.xlu2 %265  ;;  %v292_v37 = vperm.slane %v260_v24, %v291_v28 }
  0x9a   : > { %v272_v25 = vpop.xlane.xlu1 %271  ;;  %v298_v39 = vperm.slane %v266_v27, %v297_v32 }
  0x9b   : > { %v305_v38 = vperm.slane %v272_v25, %v291_v28 }
  0xa0   : > { %v263_v29 = vpop.xlane.xlu0 %262 }
  0xa1   : > { %v294_v33 = vperm.slane %v263_v29, %v293_v30  ;;  %v278_v35 = vpop.xlane.xlu2 %277 }
  0xa2   : > { %v275_v31 = vpop.xlane.xlu1 %274  ;;  %v308_v40 = vperm.slane %v278_v35, %v297_v32 }
  0xa3   : > { %v306_v34 = vperm.slane %v275_v31, %v293_v30  ;;  %v296_v42 = vsel %vm295_vm0, %v294_v33, %v292_v37 }
  0xa4   : > { %v300_v48 = vsel %vm299_vm1, %v298_v39, %v296_v42 }
  0xa5   : > { %v307_v43 = vsel %vm295_vm0, %v306_v34, %v305_v38 }
  0xa6   : > { %v309_v47 = vsel %vm299_vm1, %v308_v40, %v307_v43 }
  0xa8   : > { %v269_v41 = vpop.xlane.xlu0 %268 }
  0xa9   : > { %v302_v44 = vperm.slane %v269_v41, %v301_v36 }
  0xaa   : > { %v281_v45 = vpop.xlane.xlu1 %280 }
  0xab   : > { %v310_v46 = vperm.slane %v281_v45, %v301_v36  ;;  %v304_v49 = vsel %vm303_vm2, %v302_v44, %v300_v48 }
  0xad   : > { %v311_v50 = vsel %vm303_vm2, %v310_v46, %v309_v47 }
  0xae   : > { %v313_v51 = vsel %vm312_vm3, %v311_v50, %v304_v49 }
  0xaf   : > { %316 = vst.msk [vmem:[%s152_s9] sm:$0x3] %vm315_vm4, %v313_v51 }
  0xb0   : > { %550 = shalt.err (!%p547_p13)
}
  0xb1   : > { %431 = dma.vmem_to_hbm [thread:$0]  (%p670_p9), %s331_s24, 32, %s333_s25, %s318_s26  }
  0xb2 PF: > { %s344_s5 = sand.u32 1, %s585_s6   ;;  %p438_p0 = pnand %p417_p12, %p677_p11 }
  0xb3   : > { %s345_s12 = scalar_lea.sflag [#allocation5], %s344_s5 }
  0xb4   : > { %p439_p1 = pneg %p438_p0 }
  0xb6   : > { %580 = dma.done.wait (%p439_p1), %s345_s12, 32  }
  0xb7   : > { %582 = vsyncadd (%p439_p1), %s345_s12, 4294967264  ;;  %s17_s11 = sadd.s32 1, %s605_s11   ;;  %s746_s6 = smov %s589_s7 }
  0xb8   : > { %p14_p2 = scmp.ge.s32.totalorder %s17_s11, 4   ;;  %s747_s7 = smov %s593_s8 }
  0xb9   : > { %s748_s8 = smov %s675_s20  ;;  %s749_s9 = smov %s601_s10 }
  0xba   : > { %s750_s10 = smov %s752_s14  ;;  %16 = sbr.rel (!%p14_p2) target bundleno = 6 (0x6), region = 78 }
  0xbf   :  { %351 = vsyncpa [#allocation4], 1 }
  0xc0   :  { %353 = vsyncpa [#allocation4 + $0x1], 1 }
  0xc1   :  { %354 = vsyncpa [#allocation5], 1 }
  0xc2   :  { %356 = vsyncpa [#allocation5 + $0x1], 1 }

</bundles_post_ra>
